<compile_context>
chip_gen: v7x
topology: tpu7x:2x2x1
jax: 0.10.0
libtpu: 0.0.40
codegen_flags: <defaults>
</compile_context>

<pallas_src>
import functools

import jax
import jax.numpy as jnp
from jax.experimental import pallas as pl
from jax.experimental.pallas import tpu as pltpu

LOG_STD_MIN = -20.0
LOG_STD_MAX = 2.0


def _round_up(x, m):
    return ((x + m - 1) // m) * m


def _policy_mlp_kernel(x_s_ref, x_p_ref, w1s_ref, w1p_ref, b1_ref,
                       w2_ref, b2_ref, wm_ref, bm_ref, ws_ref, bs_ref,
                       mean_ref, log_std_ref, *, compute_dtype):
    # fc1: split-input matmuls replace the wrapper-side concat(state, set_indices).
    x_s = x_s_ref[...].astype(compute_dtype)
    x_p = x_p_ref[...].astype(compute_dtype)          # int -> float cast in-kernel
    h1 = (jnp.dot(x_s, w1s_ref[...], preferred_element_type=jnp.float32)
          + jnp.dot(x_p, w1p_ref[...], preferred_element_type=jnp.float32)
          + b1_ref[...])
    h1 = jnp.maximum(h1, 0.0).astype(compute_dtype)   # [TB, 128]

    # fc2 + relu
    h2 = jnp.dot(h1, w2_ref[...], preferred_element_type=jnp.float32) + b2_ref[...]
    h2 = jnp.maximum(h2, 0.0).astype(compute_dtype)   # [TB, 32]

    # Two narrow heads, written directly (no lane padding, no masking select).
    mean_ref[...] = (
        jnp.dot(h2, wm_ref[...], preferred_element_type=jnp.float32) + bm_ref[...])
    log_std = (
        jnp.dot(h2, ws_ref[...], preferred_element_type=jnp.float32) + bs_ref[...])
    log_std_ref[...] = jnp.clip(log_std, LOG_STD_MIN, LOG_STD_MAX)


def prepare_params(params, state_dim, *, compute_dtype=jnp.float32):
    """One-time weight prep (fc1 split + dtype casts). Call once, reuse per step."""
    return dict(
        w1_s=params["w1"][:state_dim].astype(compute_dtype),
        w1_p=params["w1"][state_dim:].astype(compute_dtype),
        b1=params["b1"].astype(jnp.float32),
        w2=params["w2"].astype(compute_dtype),
        b2=params["b2"].astype(jnp.float32),
        wm=params["wm"].astype(compute_dtype),
        bm=params["bm"].astype(jnp.float32),
        ws=params["ws"].astype(compute_dtype),
        bs=params["bs"].astype(jnp.float32),
        compute_dtype=compute_dtype,
    )


def _choose_tb(batch, tb_max, sublane):
    """Batch tile: minimize tail padding, keep sublane multiple, prefer >=2 steps."""
    b_r = _round_up(max(batch, 1), sublane)
    if b_r <= sublane:
        return sublane
    # >= 2 grid steps whenever possible so v7x's two TensorCores both get work.
    n_steps = max(pl.cdiv(b_r, tb_max), 2)
    tb = _round_up(pl.cdiv(b_r, n_steps), sublane)
    return min(tb, tb_max)


def gaussian_nn_policy_forward(state, set_indices, params, label=None, *,
                               compute_dtype=jnp.float32, batch_block=1024):
    """Pallas equivalent of GaussianNNPolicy.forward (label is unused)."""
    del label
    B, state_dim = state.shape
    prev_actions = set_indices.shape[1]

    # Accept either raw PyTorch-style params or a prepared dict (preferred).
    if "w1_s" in params:
        prep = params
        compute_dtype = prep["compute_dtype"]
    else:
        prep = prepare_params(params, state_dim, compute_dtype=compute_dtype)

    h1_dim = prep["w1_s"].shape[1]
    h2_dim = prep["w2"].shape[1]
    action_dim = prep["wm"].shape[1]

    # --- batch tiling ---------------------------------------------------------
    sublane = 16 if compute_dtype == jnp.bfloat16 else 8
    tb_max = max(sublane, (batch_block // sublane) * sublane)
    TB = _choose_tb(B, tb_max, sublane)
    B_pad = _round_up(B, TB)
    if B_pad != B:
        state = jnp.pad(state, ((0, B_pad - B), (0, 0)))
        set_indices = jnp.pad(set_indices, ((0, B_pad - B), (0, 0)))

    kernel = functools.partial(_policy_mlp_kernel, compute_dtype=compute_dtype)

    grid_spec = pltpu.PrefetchScalarGridSpec(
        num_scalar_prefetch=0,
        grid=(B_pad // TB,),
        in_specs=[
            pl.BlockSpec((TB, state_dim), lambda i: (i, 0)),
            pl.BlockSpec((TB, prev_actions), lambda i: (i, 0)),
            pl.BlockSpec((state_dim, h1_dim), lambda i: (0, 0)),
            pl.BlockSpec((prev_actions, h1_dim), lambda i: (0, 0)),
            pl.BlockSpec((1, h1_dim), lambda i: (0, 0)),
            pl.BlockSpec((h1_dim, h2_dim), lambda i: (0, 0)),
            pl.BlockSpec((1, h2_dim), lambda i: (0, 0)),
            pl.BlockSpec((h2_dim, action_dim), lambda i: (0, 0)),
            pl.BlockSpec((1, action_dim), lambda i: (0, 0)),
            pl.BlockSpec((h2_dim, action_dim), lambda i: (0, 0)),
            pl.BlockSpec((1, action_dim), lambda i: (0, 0)),
        ],
        out_specs=[
            pl.BlockSpec((TB, action_dim), lambda i: (i, 0)),
            pl.BlockSpec((TB, action_dim), lambda i: (i, 0)),
        ],
    )

    # Advisory cost estimate: short memory-bound call; let XLA schedule around it.
    in1 = state_dim + prev_actions
    flops = 2 * B_pad * (in1 * h1_dim + h1_dim * h2_dim + h2_dim * 2 * action_dim)
    weight_bytes = sum(int(v.size) * v.dtype.itemsize
                       for k, v in prep.items() if k != "compute_dtype")
    io_bytes = B_pad * (state.dtype.itemsize * state_dim
                        + set_indices.dtype.itemsize * prev_actions
                        + 4 * 2 * action_dim)
    cost = pl.CostEstimate(flops=flops, transcendentals=0,
                           bytes_accessed=weight_bytes + io_bytes)

    mean, log_std = pl.pallas_call(
        kernel,
        out_shape=(jax.ShapeDtypeStruct((B_pad, action_dim), jnp.float32),
                   jax.ShapeDtypeStruct((B_pad, action_dim), jnp.float32)),
        grid_spec=grid_spec,
        compiler_params=pltpu.CompilerParams(
            dimension_semantics=("parallel",)),
        cost_estimate=cost,
    )(state, set_indices,
      prep["w1_s"], prep["w1_p"], prep["b1"],
      prep["w2"], prep["b2"],
      prep["wm"], prep["bm"], prep["ws"], prep["bs"])

    if B_pad != B:
        mean = mean[:B]
        log_std = log_std[:B]
    return mean, log_std


def init_params(key, state_dim, prev_actions, action_dim):
    """Deterministic synthetic parameters (PyTorch-Linear shapes, transposed)."""
    in1 = state_dim + prev_actions
    keys = jax.random.split(key, 8)

    def lin(kw, kb, fan_in, fan_out):
        bound = 1.0 / jnp.sqrt(jnp.float32(fan_in))
        w = jax.random.uniform(kw, (fan_in, fan_out), jnp.float32, -bound, bound)
        b = jax.random.uniform(kb, (1, fan_out), jnp.float32, -bound, bound)
        return w, b

    w1, b1 = lin(keys[0], keys[1], in1, 128)
    w2, b2 = lin(keys[2], keys[3], 128, 32)
    wm, bm = lin(keys[4], keys[5], 32, action_dim)
    ws, bs = lin(keys[6], keys[7], 32, action_dim)
    return dict(w1=w1, b1=b1, w2=w2, b2=b2, wm=wm, bm=bm, ws=ws, bs=bs)


def _reference_forward(state, set_indices, params):
    x = jnp.concatenate(
        [state.astype(jnp.float32), set_indices.astype(jnp.float32)], axis=1)
    h1 = jnp.maximum(x @ params["w1"] + params["b1"], 0.0)
    h2 = jnp.maximum(h1 @ params["w2"] + params["b2"], 0.0)
    mean = h2 @ params["wm"] + params["bm"]
    log_std = jnp.clip(h2 @ params["ws"] + params["bs"], LOG_STD_MIN, LOG_STD_MAX)
    return mean, log_std


if __name__ == "__main__":
    state_dim = 16
    prev_actions = 8
    action_dim = 4
    batch = 2

    key = jax.random.PRNGKey(0)
    k_state, k_idx, k_params, k_state2, k_idx2 = jax.random.split(key, 5)

    state = jax.random.normal(k_state, (batch, state_dim), jnp.float32)
    # set_indices arrive as ints in the original code; cast happens in-kernel.
    set_indices = jax.random.randint(
        k_idx, (batch, prev_actions), 0, 2).astype(jnp.int32)
    # label is unused by forward(); pass nothing.

    params = init_params(k_params, state_dim, prev_actions, action_dim)

    # 1) small batch, f32 path, raw params (prepared on the fly): exact match.
    mean, log_std = gaussian_nn_policy_forward(state, set_indices, params)
    jax.block_until_ready((mean, log_std))
    ref_mean, ref_log_std = _reference_forward(state, set_indices, params)
    assert mean.shape == (batch, action_dim) and log_std.shape == (batch, action_dim)
    assert jnp.allclose(mean, ref_mean, atol=1e-5, rtol=1e-5)
    assert jnp.allclose(log_std, ref_log_std, atol=1e-5, rtol=1e-5)

    # 2) larger, non-tile-aligned batch with hoisted (prepared) params:
    #    exercises the >=2-step batch grid + minimal tail padding.
    prep_f32 = prepare_params(params, state_dim, compute_dtype=jnp.float32)
    big_b = 300
    state_b = jax.random.normal(k_state2, (big_b, state_dim), jnp.float32)
    set_idx_b = jax.random.randint(
        k_idx2, (big_b, prev_actions), 0, 2).astype(jnp.int32)
    mean_b, log_std_b = gaussian_nn_policy_forward(state_b, set_idx_b, prep_f32)
    jax.block_until_ready((mean_b, log_std_b))
    ref_mean_b, ref_log_std_b = _reference_forward(state_b, set_idx_b, params)
    assert jnp.allclose(mean_b, ref_mean_b, atol=1e-5, rtol=1e-5)
    assert jnp.allclose(log_std_b, ref_log_std_b, atol=1e-5, rtol=1e-5)

    # 3) bf16 MXU operands (v6e/v7x opt-in fast path), f32 accumulation/epilogue.
    prep_bf16 = prepare_params(params, state_dim, compute_dtype=jnp.bfloat16)
    mean_bf, log_std_bf = gaussian_nn_policy_forward(state_b, set_idx_b, prep_bf16)
    jax.block_until_ready((mean_bf, log_std_bf))
    assert jnp.allclose(mean_bf, ref_mean_b, atol=5e-2, rtol=5e-2)
    assert jnp.allclose(log_std_bf, ref_log_std_b, atol=5e-2, rtol=5e-2)

    # TODO(synk): sample() (rsample + tanh squash + log_prob) needs RNG-based
    # sampling; it could be added with pltpu.prng_* but only forward() is required here.
    print("KERNEL_OK")
</pallas_src>

<mosaic_0001>
module attributes {stable_mosaic.version = 11 : i64} {
  func.func @_policy_mlp_kernel(%arg0: i32, %arg1: memref<8x16xf32, #tpu.memory_space<vmem>>, %arg2: memref<8x8xi32, #tpu.memory_space<vmem>>, %arg3: memref<16x128xf32, #tpu.memory_space<vmem>>, %arg4: memref<8x128xf32, #tpu.memory_space<vmem>>, %arg5: memref<1x128xf32, #tpu.memory_space<vmem>>, %arg6: memref<128x32xf32, #tpu.memory_space<vmem>>, %arg7: memref<1x32xf32, #tpu.memory_space<vmem>>, %arg8: memref<32x4xf32, #tpu.memory_space<vmem>>, %arg9: memref<1x4xf32, #tpu.memory_space<vmem>>, %arg10: memref<32x4xf32, #tpu.memory_space<vmem>>, %arg11: memref<1x4xf32, #tpu.memory_space<vmem>>, %arg12: memref<8x4xf32, #tpu.memory_space<vmem>>, %arg13: memref<8x4xf32, #tpu.memory_space<vmem>>) attributes {dimension_semantics = [#tpu.dimension_semantics<parallel>], iteration_bounds = array<i64: 1>, scalar_prefetch = 0 : i64, scratch_operands = 0 : i64, tpu.core_type = #tpu.core_type<tc>, window_params = [{transform_indices = @transform_0, window_bounds = array<i64: 8, 16>}, {transform_indices = @transform_1, window_bounds = array<i64: 8, 8>}, {pipeline_mode = #tpu.pipeline_mode<synchronous>, transform_indices = @transform_2, window_bounds = array<i64: 16, 128>}, {pipeline_mode = #tpu.pipeline_mode<synchronous>, transform_indices = @transform_3, window_bounds = array<i64: 8, 128>}, {pipeline_mode = #tpu.pipeline_mode<synchronous>, transform_indices = @transform_4, window_bounds = array<i64: 1, 128>}, {pipeline_mode = #tpu.pipeline_mode<synchronous>, transform_indices = @transform_5, window_bounds = array<i64: 128, 32>}, {pipeline_mode = #tpu.pipeline_mode<synchronous>, transform_indices = @transform_6, window_bounds = array<i64: 1, 32>}, {pipeline_mode = #tpu.pipeline_mode<synchronous>, transform_indices = @transform_7, window_bounds = array<i64: 32, 4>}, {pipeline_mode = #tpu.pipeline_mode<synchronous>, transform_indices = @transform_8, window_bounds = array<i64: 1, 4>}, {pipeline_mode = #tpu.pipeline_mode<synchronous>, transform_indices = @transform_9, window_bounds = array<i64: 32, 4>}, {pipeline_mode = #tpu.pipeline_mode<synchronous>, transform_indices = @transform_10, window_bounds = array<i64: 1, 4>}, {transform_indices = @transform_11, window_bounds = array<i64: 8, 4>}, {transform_indices = @transform_12, window_bounds = array<i64: 8, 4>}]} {
    %c0 = arith.constant 0 : index
    %c0_0 = arith.constant 0 : index
    %0 = vector.load %arg1[%c0, %c0_0] : memref<8x16xf32, #tpu.memory_space<vmem>>, vector<8x16xf32>
    %c0_1 = arith.constant 0 : index
    %c0_2 = arith.constant 0 : index
    %1 = vector.load %arg2[%c0_1, %c0_2] : memref<8x8xi32, #tpu.memory_space<vmem>>, vector<8x8xi32>
    %2 = arith.sitofp %1 : vector<8x8xi32> to vector<8x8xf32>
    %c0_3 = arith.constant 0 : index
    %c0_4 = arith.constant 0 : index
    %3 = vector.load %arg3[%c0_3, %c0_4] : memref<16x128xf32, #tpu.memory_space<vmem>>, vector<16x128xf32>
    %cst = arith.constant dense<0.000000e+00> : vector<8x128xf32>
    %4 = tpu.matmul %0, %3, %cst {dimension_numbers = #tpu.dot_dimension_numbers<[1], [0], [0], [1], [0, 0, 1, 1], [], []>} : vector<8x16xf32>, vector<16x128xf32>, vector<8x128xf32> -> vector<8x128xf32>
    %c0_5 = arith.constant 0 : index
    %c0_6 = arith.constant 0 : index
    %5 = vector.load %arg4[%c0_5, %c0_6] : memref<8x128xf32, #tpu.memory_space<vmem>>, vector<8x128xf32>
    %cst_7 = arith.constant dense<0.000000e+00> : vector<8x128xf32>
    %6 = tpu.matmul %2, %5, %cst_7 {dimension_numbers = #tpu.dot_dimension_numbers<[1], [0], [0], [1], [0, 0, 1, 1], [], []>} : vector<8x8xf32>, vector<8x128xf32>, vector<8x128xf32> -> vector<8x128xf32>
    %7 = arith.addf %4, %6 : vector<8x128xf32>
    %c0_8 = arith.constant 0 : index
    %c0_9 = arith.constant 0 : index
    %8 = vector.load %arg5[%c0_8, %c0_9] : memref<1x128xf32, #tpu.memory_space<vmem>>, vector<1x128xf32>
    %9 = vector.broadcast %8 : vector<1x128xf32> to vector<8x128xf32>
    %10 = arith.addf %7, %9 : vector<8x128xf32>
    %cst_10 = arith.constant 0.000000e+00 : f32
    %11 = vector.broadcast %cst_10 : f32 to vector<8x128xf32>
    %12 = arith.maximumf %10, %11 : vector<8x128xf32>
    %c0_11 = arith.constant 0 : index
    %c0_12 = arith.constant 0 : index
    %13 = vector.load %arg6[%c0_11, %c0_12] : memref<128x32xf32, #tpu.memory_space<vmem>>, vector<128x32xf32>
    %cst_13 = arith.constant dense<0.000000e+00> : vector<8x32xf32>
    %14 = tpu.matmul %12, %13, %cst_13 {dimension_numbers = #tpu.dot_dimension_numbers<[1], [0], [0], [1], [0, 0, 1, 1], [], []>} : vector<8x128xf32>, vector<128x32xf32>, vector<8x32xf32> -> vector<8x32xf32>
    %c0_14 = arith.constant 0 : index
    %c0_15 = arith.constant 0 : index
    %15 = vector.load %arg7[%c0_14, %c0_15] : memref<1x32xf32, #tpu.memory_space<vmem>>, vector<1x32xf32>
    %16 = vector.broadcast %15 : vector<1x32xf32> to vector<8x32xf32>
    %17 = arith.addf %14, %16 : vector<8x32xf32>
    %cst_16 = arith.constant 0.000000e+00 : f32
    %18 = vector.broadcast %cst_16 : f32 to vector<8x32xf32>
    %19 = arith.maximumf %17, %18 : vector<8x32xf32>
    %c0_17 = arith.constant 0 : index
    %c0_18 = arith.constant 0 : index
    %20 = vector.load %arg8[%c0_17, %c0_18] : memref<32x4xf32, #tpu.memory_space<vmem>>, vector<32x4xf32>
    %cst_19 = arith.constant dense<0.000000e+00> : vector<8x4xf32>
    %21 = tpu.matmul %19, %20, %cst_19 {dimension_numbers = #tpu.dot_dimension_numbers<[1], [0], [0], [1], [0, 0, 1, 1], [], []>} : vector<8x32xf32>, vector<32x4xf32>, vector<8x4xf32> -> vector<8x4xf32>
    %c0_20 = arith.constant 0 : index
    %c0_21 = arith.constant 0 : index
    %22 = vector.load %arg9[%c0_20, %c0_21] : memref<1x4xf32, #tpu.memory_space<vmem>>, vector<1x4xf32>
    %23 = vector.broadcast %22 : vector<1x4xf32> to vector<8x4xf32>
    %24 = arith.addf %21, %23 : vector<8x4xf32>
    %c0_22 = arith.constant 0 : index
    %c0_23 = arith.constant 0 : index
    %25 = vector.load %arg12[%c0_22, %c0_23] : memref<8x4xf32, #tpu.memory_space<vmem>>, vector<8x4xf32>
    tpu.vector_store %arg12[%c0_22, %c0_23], %24 {strides = array<i32>} : memref<8x4xf32, #tpu.memory_space<vmem>>, vector<8x4xf32>,
    %c0_24 = arith.constant 0 : index
    %c0_25 = arith.constant 0 : index
    %26 = vector.load %arg10[%c0_24, %c0_25] : memref<32x4xf32, #tpu.memory_space<vmem>>, vector<32x4xf32>
    %cst_26 = arith.constant dense<0.000000e+00> : vector<8x4xf32>
    %27 = tpu.matmul %19, %26, %cst_26 {dimension_numbers = #tpu.dot_dimension_numbers<[1], [0], [0], [1], [0, 0, 1, 1], [], []>} : vector<8x32xf32>, vector<32x4xf32>, vector<8x4xf32> -> vector<8x4xf32>
    %c0_27 = arith.constant 0 : index
    %c0_28 = arith.constant 0 : index
    %28 = vector.load %arg11[%c0_27, %c0_28] : memref<1x4xf32, #tpu.memory_space<vmem>>, vector<1x4xf32>
    %29 = vector.broadcast %28 : vector<1x4xf32> to vector<8x4xf32>
    %30 = arith.addf %27, %29 : vector<8x4xf32>
    %cst_29 = arith.constant -2.000000e+01 : f32
    %cst_30 = arith.constant 2.000000e+00 : f32
    %31 = vector.broadcast %cst_29 : f32 to vector<8x4xf32>
    %32 = arith.maximumf %31, %30 : vector<8x4xf32>
    %33 = vector.broadcast %cst_30 : f32 to vector<8x4xf32>
    %34 = arith.minimumf %33, %32 : vector<8x4xf32>
    %c0_31 = arith.constant 0 : index
    %c0_32 = arith.constant 0 : index
    %35 = vector.load %arg13[%c0_31, %c0_32] : memref<8x4xf32, #tpu.memory_space<vmem>>, vector<8x4xf32>
    tpu.vector_store %arg13[%c0_31, %c0_32], %34 {strides = array<i32>} : memref<8x4xf32, #tpu.memory_space<vmem>>, vector<8x4xf32>,
    return
  }
  func.func @transform_0(%arg0: i32) -> (i32, i32) {
    %c0_i32 = arith.constant 0 : i32
    %c0_i32_0 = arith.constant 0 : i32
    return %arg0, %c0_i32 : i32, i32
  }
  func.func @transform_1(%arg0: i32) -> (i32, i32) {
    %c0_i32 = arith.constant 0 : i32
    %c0_i32_0 = arith.constant 0 : i32
    return %arg0, %c0_i32 : i32, i32
  }
  func.func @transform_2(%arg0: i32) -> (i32, i32) {
    %c0_i32 = arith.constant 0 : i32
    %c0_i32_0 = arith.constant 0 : i32
    %c0_i32_1 = arith.constant 0 : i32
    return %c0_i32, %c0_i32_0 : i32, i32
  }
  func.func @transform_3(%arg0: i32) -> (i32, i32) {
    %c0_i32 = arith.constant 0 : i32
    %c0_i32_0 = arith.constant 0 : i32
    %c0_i32_1 = arith.constant 0 : i32
    return %c0_i32, %c0_i32_0 : i32, i32
  }
  func.func @transform_4(%arg0: i32) -> (i32, i32) {
    %c0_i32 = arith.constant 0 : i32
    %c0_i32_0 = arith.constant 0 : i32
    %c0_i32_1 = arith.constant 0 : i32
    return %c0_i32, %c0_i32_0 : i32, i32
  }
  func.func @transform_5(%arg0: i32) -> (i32, i32) {
    %c0_i32 = arith.constant 0 : i32
    %c0_i32_0 = arith.constant 0 : i32
    %c0_i32_1 = arith.constant 0 : i32
    return %c0_i32, %c0_i32_0 : i32, i32
  }
  func.func @transform_6(%arg0: i32) -> (i32, i32) {
    %c0_i32 = arith.constant 0 : i32
    %c0_i32_0 = arith.constant 0 : i32
    %c0_i32_1 = arith.constant 0 : i32
    return %c0_i32, %c0_i32_0 : i32, i32
  }
  func.func @transform_7(%arg0: i32) -> (i32, i32) {
    %c0_i32 = arith.constant 0 : i32
    %c0_i32_0 = arith.constant 0 : i32
    %c0_i32_1 = arith.constant 0 : i32
    return %c0_i32, %c0_i32_0 : i32, i32
  }
  func.func @transform_8(%arg0: i32) -> (i32, i32) {
    %c0_i32 = arith.constant 0 : i32
    %c0_i32_0 = arith.constant 0 : i32
    %c0_i32_1 = arith.constant 0 : i32
    return %c0_i32, %c0_i32_0 : i32, i32
  }
  func.func @transform_9(%arg0: i32) -> (i32, i32) {
    %c0_i32 = arith.constant 0 : i32
    %c0_i32_0 = arith.constant 0 : i32
    %c0_i32_1 = arith.constant 0 : i32
    return %c0_i32, %c0_i32_0 : i32, i32
  }
  func.func @transform_10(%arg0: i32) -> (i32, i32) {
    %c0_i32 = arith.constant 0 : i32
    %c0_i32_0 = arith.constant 0 : i32
    %c0_i32_1 = arith.constant 0 : i32
    return %c0_i32, %c0_i32_0 : i32, i32
  }
  func.func @transform_11(%arg0: i32) -> (i32, i32) {
    %c0_i32 = arith.constant 0 : i32
    %c0_i32_0 = arith.constant 0 : i32
    return %arg0, %c0_i32 : i32, i32
  }
  func.func @transform_12(%arg0: i32) -> (i32, i32) {
    %c0_i32 = arith.constant 0 : i32
    %c0_i32_0 = arith.constant 0 : i32
    return %arg0, %c0_i32 : i32, i32
  }
}

</mosaic_0001>

<bundles_post_ra>
// kernel: tpu_custom_call.1
= control target key start
LH: loop header
LB: loop body
LE: loop exit
PB: predicated region body
PF: predicated region fallthrough
CT: control target
= control target key end

     0   :  { %v627_v0 = vmov 0.0   ;;  %vm628_vm0 = vmmov 0   ;;  %vm46_vm1 = vcmask 64512   ;;  %v629_v6 = vmov 0.0|0.0   ;;  %s824_s3 = inlined_call_operand.vmem [shape: f32[8,128], index: 3, kind: input, shape index: {}]   ;;  %s825_s1 = inlined_call_operand.vmem [shape: s32[8,8], index: 1, kind: input, shape index: {}]   ;;  %s826_s2 = inlined_call_operand.vmem [shape: f32[16,128], index: 2, kind: input, shape index: {}]   ;;  %s827_s5 = inlined_call_operand.vmem [shape: f32[128,32], index: 5, kind: input, shape index: {}]   ;;  %s828_s0 = inlined_call_operand.vmem [shape: f32[8,16], index: 0, kind: input, shape index: {}]   ;;  %s829_s7 = inlined_call_operand.vmem [shape: f32[32,4], index: 7, kind: input, shape index: {}]   ;;  %s830_s4 = inlined_call_operand.vmem [shape: f32[1,128], index: 4, kind: input, shape index: {}]   ;;  %s831_s6 = inlined_call_operand.vmem [shape: f32[1,32], index: 6, kind: input, shape index: {}]   ;;  %s832_s9 = inlined_call_operand.vmem [shape: f32[32,4], index: 9, kind: input, shape index: {}]   ;;  %s833_s8 = inlined_call_operand.vmem [shape: f32[1,4], index: 8, kind: input, shape index: {}]   ;;  %s834_s11 = inlined_call_operand.vmem [shape: f32[8,4], index: 11, kind: output, shape index: {0}]   ;;  %s835_s10 = inlined_call_operand.vmem [shape: f32[1,4], index: 10, kind: input, shape index: {}]   ;;  %s836_s12 = inlined_call_operand.vmem [shape: f32[8,4], index: 12, kind: output, shape index: {1}]  }
   0x1   :  { %516 = vmatprep.subr.mxu1 %v627_v0  ;;  %v45_v1 = vld [vmem:[%s824_s3] sm:$0xff]  ;;  %518 = vmatprep.mubr.msk.f32.mxu1 %vm628_vm0, %v627_v0  ;;  %v44_v5 = vld [vmem:[%s826_s2 + $0x8] sm:$0xff]  ;;  %v205_v10 = vld [vmem:[%s827_s5 + $0x10] sm:$0xff]  ;;  %vm120_vm2 = vcmask 130048   ;;  %vm308_vm3 = vcmask 261120   ;;  %vm382_vm4 = vcmask 31744  }
   0x2   :  { %v41_v2 = vld [vmem:[%s825_s1] sm:$0xff]  ;;  %517 = vmatpush3.msra.mxu1 %v45_v1  ;;  %588 = vmatprep.subr.bf16.mxu0 %v629_v6  ;;  %v204_v9 = vld [vmem:[%s827_s5 + $0x8] sm:$0xff]  ;;  %v206_v11 = vld [vmem:[%s827_s5 + $0x18] sm:$0xff] }
   0x3   :  { %v43_v3 = vld [vmem:[%s826_s2] sm:$0xff]  ;;  %v42_v4 = vcvt.s32.f32 %v41_v2  ;;  %585 = vmatprep.subr.bf16.mxu1 %v629_v6  ;;  %560 = vmatprep.mubr.msk.f32.mxu0 %vm628_vm0, %v627_v0  ;;  %v592_v14 = vpack.c.bf16 %v206_v11, %v205_v10  ;;  %v208_v16 = vld [vmem:[%s827_s5 + $0x28] sm:$0xff]  ;;  %v209_v18 = vld [vmem:[%s827_s5 + $0x30] sm:$0xff] }
   0x4   :  { %v203_v7 = vld [vmem:[%s827_s5] sm:$0xff]  ;;  %v586_v8 = vpack.c.bf16 %v44_v5, %v43_v3  ;;  %v210_v19 = vld [vmem:[%s827_s5 + $0x38] sm:$0xff]  ;;  %v212_v22 = vld [vmem:[%s827_s5 + $0x48] sm:$0xff] }
   0x5   :  { %519 = vmatmul.mubr.msk.f32.vlgmr.msra.gmra.mrb[0].mxu1 %vm46_vm1, %v42_v4  ;;  %v589_v12 = vpack.c.bf16 %v204_v9, %v203_v7  ;;  %v40_v13 = vld [vmem:[%s828_s0] sm:$0xff]  ;;  %v598_v20 = vpack.c.bf16 %v210_v19, %v209_v18  ;;  %v213_v24 = vld [vmem:[%s827_s5 + $0x50] sm:$0xff]  ;;  %v214_v25 = vld [vmem:[%s827_s5 + $0x58] sm:$0xff] }
   0x6   :  { %587 = vmatpush3.bf16.msra.mxu1 %v586_v8  ;;  %525 = vmatprep.mubr.msk.f32.mxu1 %vm628_vm0, %v627_v0  ;;  %v207_v15 = vld [vmem:[%s827_s5 + $0x20] sm:$0xff]  ;;  %v604_v26 = vpack.c.bf16 %v214_v25, %v213_v24  ;;  %v216_v28 = vld [vmem:[%s827_s5 + $0x68] sm:$0xff]  ;;  %v217_v30 = vld [vmem:[%s827_s5 + $0x70] sm:$0xff] }
   0x7   :  { %590 = vmatpush3.bf16.msra.mxu0 %v589_v12  ;;  %612 = vmatprep.subr.bf16.mxu1 %v629_v6  ;;  %v595_v17 = vpack.c.bf16 %v208_v16, %v207_v15  ;;  %v211_v21 = vld [vmem:[%s827_s5 + $0x40] sm:$0xff]  ;;  %v218_v31 = vld [vmem:[%s827_s5 + $0x78] sm:$0xff]  ;;  %v298_v34 = vld [vmem:[%s829_s7 + $0x8] sm:$0xff] }
   0x8   :  { %591 = vmatprep.subr.bf16.mxu0 %v629_v6  ;;  %v601_v23 = vpack.c.bf16 %v212_v22, %v211_v21  ;;  %v215_v27 = vld [vmem:[%s827_s5 + $0x60] sm:$0xff]  ;;  %v610_v32 = vpack.c.bf16 %v218_v31, %v217_v30  ;;  %v299_v44 = vld [vmem:[%s829_s7 + $0x10] sm:$0xff]  ;;  %v300_v45 = vld [vmem:[%s829_s7 + $0x18] sm:$0xff] }
   0x9   :  { %526 = vmatmul.mubr.msk.f32.vlgmr.msra.gmra.mrb[2].mxu1 %vm120_vm2, %v40_v13  ;;  %v607_v29 = vpack.c.bf16 %v216_v28, %v215_v27  ;;  %v297_v33 = vld [vmem:[%s829_s7] sm:$0xff]  ;;  %v616_v46 = vpack.c.bf16 %v300_v45, %v299_v44  ;;  %v385_v49 = vld [vmem:[%s832_s9 + $0x8] sm:$0xff]  ;;  %v386_v55 = vld [vmem:[%s832_s9 + $0x10] sm:$0xff] }
   0xa   :  { %571 = vmatprep.mubr.msk.f32.mxu1 %vm628_vm0, %v627_v0  ;;  %v613_v35 = vpack.c.bf16 %v298_v34, %v297_v33  ;;  %v478_v39 = vld [vmem:[%s830_s4] ss:$0 sm:$0xff]  ;;  %v387_v56 = vld [vmem:[%s832_s9 + $0x18] sm:$0xff] }
   0xb   :  { %593 = vmatpush3.bf16.msra.mxu0 %v592_v14  ;;  %v479_v47 = vld [vmem:[%s831_s6] ss:$0 sm:$0xff]  ;;  %v622_v57 = vpack.c.bf16 %v387_v56, %v386_v55 }
   0xc   :  { %594 = vmatprep.subr.bf16.mxu0 %v629_v6  ;;  %614 = vmatpush3.bf16.msra.mxu1 %v613_v35  ;;  %v384_v48 = vld [vmem:[%s832_s9] sm:$0xff] }
   0xd   :  { %615 = vmatprep.subr.bf16.mxu1 %v629_v6  ;;  %v619_v53 = vpack.c.bf16 %v385_v49, %v384_v48  ;;  %v480_v58 = vld [vmem:[%s833_s8] ss:$0 sm:$0xff] }
   0xe   :  { %v482_v62 = vld [vmem:[%s835_s10] ss:$0 sm:$0xff] }
   0xf   :  { %596 = vmatpush3.bf16.msra.mxu0 %v595_v17 }
  0x10   :  { %597 = vmatprep.subr.bf16.mxu0 %v629_v6  ;;  %617 = vmatpush3.bf16.msra.mxu1 %v616_v46 }
  0x11   :  { %618 = vmatprep.subr.bf16.mxu1 %v629_v6 }
  0x13   :  { %599 = vmatpush3.bf16.msra.mxu0 %v598_v20 }
  0x14   :  { %600 = vmatprep.subr.bf16.mxu0 %v629_v6 }
  0x17   :  { %602 = vmatpush3.bf16.msra.mxu0 %v601_v23 }
  0x18   :  { %603 = vmatprep.subr.bf16.mxu0 %v629_v6 }
  0x1b   :  { %605 = vmatpush3.bf16.msra.mxu0 %v604_v26 }
  0x1c   :  { %606 = vmatprep.subr.bf16.mxu0 %v629_v6 }
  0x1f   :  { %608 = vmatpush3.bf16.msra.mxu0 %v607_v29 }
  0x20   :  { %609 = vmatprep.subr.bf16.mxu0 %v629_v6 }
  0x23   :  { %611 = vmatpush3.bf16.msra.mxu0 %v610_v32 }
  0xd8   :  { %v116_v36 = vpop.f32.mrb[0].mxu1 }
  0xd9   :  { %v520_v37 = vpop.f32.mrb[1].mxu1 }
  0xdc   :  { %v190_v38 = vpop.f32.mrb[2].mxu1 }
  0xdd   :  { %v191_v40 = vadd.f32 %v190_v38, %v116_v36  ;;  %v527_v41 = vpop.f32.mrb[3].mxu1 }
  0xdf   :  { %v201_v42 = vadd.f32 %v478_v39, %v191_v40 }
  0xe1   :  { %v202_v43 = vmax.f32 %v201_v42, 0.0 }
  0xe3   :  { %561 = vmatmul.mubr.f32.vlgmr.msra.gmra.mrb[0].mxu0 %v202_v43 }
 0x1b6   :  { %v292_v50 = vpop.f32.mrb[0].mxu0 }
 0x1b7   :  { %v293_v51 = vadd.f32 %v479_v47, %v292_v50  ;;  %v562_v52 = vpop.f32.mrb[1].mxu0 }
 0x1b9   :  { %v296_v54 = vmax.f32 %v293_v51, 0.0 }
 0x1bb   :  { %572 = vmatmul.mubr.msk.f32.vlgmr.msra.gmra.mrb[4].mxu1 %vm308_vm3, %v296_v54 }
 0x1bc   :  { %620 = vmatpush3.bf16.msra.mxu1 %v619_v53  ;;  %582 = vmatprep.mubr.msk.f32.mxu1 %vm628_vm0, %v627_v0 }
 0x1bd   :  { %621 = vmatprep.subr.bf16.mxu1 %v629_v6 }
 0x1c0   :  { %623 = vmatpush3.bf16.msra.mxu1 %v622_v57 }
 0x1c3   :  { %583 = vmatmul.mubr.msk.f32.vlgmr.msra.gmra.mrb[6].mxu1 %vm308_vm3, %v296_v54 }
 0x28e   :  { %v378_v59 = vpop.f32.mrb[4].mxu1 }
 0x28f   :  { %v379_v60 = vadd.f32 %v480_v58, %v378_v59  ;;  %v573_v61 = vpop.f32.mrb[5].mxu1 }
 0x291   :  { %383 = vst.msk [vmem:[%s834_s11] sm:$0xff] %vm382_vm4, %v379_v60 }
 0x296   :  { %v461_v63 = vpop.f32.mrb[6].mxu1 }
 0x297   :  { %v462_v0 = vadd.f32 %v482_v62, %v461_v63  ;;  %v584_v1 = vpop.f32.mrb[7].mxu1 }
 0x299   :  { %v465_v2 = vmax.f32 %v462_v0, -20.0 }
 0x29b   :  { %v466_v3 = vmin.f32 %v465_v2, 2.0 }
 0x29d   :  { %467 = vst.msk [vmem:[%s836_s12] sm:$0xff] %vm382_vm4, %v466_v3 }

</bundles_post_ra>
